<compile_context>
chip_gen: v7x
topology: tpu7x:2x2x1
jax: 0.10.0
libtpu: 0.0.40
codegen_flags: <defaults>
</compile_context>

<pallas_src>
import math

import jax
import jax.numpy as jnp
from jax import lax
from jax.experimental import pallas as pl
from jax.experimental.pallas import tpu as pltpu


def _round_up(x, m):
    return ((x + m - 1) // m) * m


def qnet_kernel(s_ref, a_ref, w1s_ref, w1a_ref, b1_ref, w2_ref, b2_ref,
                w3_ref, b3_ref, o_ref):
    s = s_ref[...]                                      # (TB, state_dim)
    a = a_ref[...]                                      # (TB, action_dim)

    # fc1 (split over the concat axis) + bias + ReLU
    h1 = (jnp.dot(s, w1s_ref[...], preferred_element_type=jnp.float32)
          + jnp.dot(a, w1a_ref[...], preferred_element_type=jnp.float32)
          + b1_ref[...])
    h1 = jnp.maximum(h1, 0.0)                           # (TB, H)

    # fc2 + bias + ReLU
    h2 = jnp.dot(h1, w2_ref[...], preferred_element_type=jnp.float32) + b2_ref[...]
    h2 = jnp.maximum(h2, 0.0)                           # (TB, H)

    # fc3: (1, H) contracted with (TB, H) along H -> (1, TB), lane-dense store.
    out = lax.dot_general(w3_ref[...], h2, (((1,), (1,)), ((), ())),
                          preferred_element_type=jnp.float32) + b3_ref[...]
    o_ref[...] = out[None].astype(o_ref.dtype)          # (1, 1, TB)


def qnetwork_forward(state, action, params, tb=1024):
    """Pallas implementation of QNetwork.forward(state, action) -> (B, 1)."""
    w1s, w1a, b1, w2, b2, w3, b3 = params
    B, state_dim = state.shape
    action_dim = action.shape[1]
    H = w2.shape[0]

    # Batch tile: multiple of 8 sublanes; big tiles amortize per-grid-step cost.
    tb = max(8, min(tb, _round_up(B, 8)))
    tb = _round_up(tb, 8)
    B_pad = _round_up(B, tb)
    grid = B_pad // tb
    if B_pad != B:
        pad = B_pad - B
        state = jnp.pad(state, ((0, pad), (0, 0)))
        action = jnp.pad(action, ((0, pad), (0, 0)))

    def resident(shape):
        # Constant block index across the grid -> weights stay VMEM-resident.
        return pl.BlockSpec(shape, lambda i: tuple(0 for _ in shape))

    out = pl.pallas_call(
        qnet_kernel,
        out_shape=jax.ShapeDtypeStruct((grid, 1, tb), jnp.float32),
        grid=(grid,),
        in_specs=[
            pl.BlockSpec((tb, state_dim), lambda i: (i, 0)),    # state tile
            pl.BlockSpec((tb, action_dim), lambda i: (i, 0)),   # action tile
            resident((state_dim, H)),                           # W1_s
            resident((action_dim, H)),                          # W1_a
            resident((1, H)),                                   # b1
            resident((H, H)),                                   # W2
            resident((1, H)),                                   # b2
            resident((1, H)),                                   # W3 (row)
            resident((1, 1)),                                   # b3
        ],
        out_specs=pl.BlockSpec((1, 1, tb), lambda i: (i, 0, 0)),
        compiler_params=pltpu.CompilerParams(
            dimension_semantics=("parallel",),
        ),
    )(state, action, w1s, w1a, b1, w2, b2, w3, b3)

    return out.reshape(B_pad, 1)[:B]


def init_params(key, state_dim, action_dim, hidden_dim):
    """Init mirroring the PyTorch module: xavier_uniform weights, default
    U(-1/sqrt(fan_in), 1/sqrt(fan_in)) biases. Weights stored (in, out); fc1's
    weight is pre-split along the concat axis; fc3's weight is a (1, H) row."""
    d_in = state_dim + action_dim

    def xavier(k, fan_in, fan_out, shape):
        bound = math.sqrt(6.0 / (fan_in + fan_out))
        return jax.random.uniform(k, shape, jnp.float32, -bound, bound)

    def bias(k, fan_in, fan_out):
        bound = 1.0 / math.sqrt(fan_in)
        return jax.random.uniform(k, (1, fan_out), jnp.float32, -bound, bound)

    ks = jax.random.split(key, 6)
    w1 = xavier(ks[0], d_in, hidden_dim, (d_in, hidden_dim))
    w1s, w1a = w1[:state_dim], w1[state_dim:]
    b1 = bias(ks[1], d_in, hidden_dim)
    w2 = xavier(ks[2], hidden_dim, hidden_dim, (hidden_dim, hidden_dim))
    b2 = bias(ks[3], hidden_dim, hidden_dim)
    w3 = xavier(ks[4], hidden_dim, 1, (1, hidden_dim))
    b3 = bias(ks[5], hidden_dim, 1)
    return (w1s, w1a, b1, w2, b2, w3, b3)


def qnetwork_ref(state, action, params):
    """Pure-JAX reference (fp32-accurate matmuls) for correctness checking."""
    w1s, w1a, b1, w2, b2, w3, b3 = params
    hp = jax.lax.Precision.HIGHEST
    h1 = jnp.maximum(jnp.dot(state, w1s, precision=hp)
                     + jnp.dot(action, w1a, precision=hp) + b1, 0.0)
    h2 = jnp.maximum(jnp.dot(h1, w2, precision=hp) + b2, 0.0)
    return jnp.dot(h2, w3.T, precision=hp) + b3


if __name__ == "__main__":
    key = jax.random.PRNGKey(0)
    k_state, k_action, k_params = jax.random.split(key, 3)

    batch = 256
    state_dim = 8
    action_dim = 4
    hidden_dim = 128   # lane-aligned hidden size

    state = jax.random.normal(k_state, (batch, state_dim), jnp.float32)
    action = jax.random.normal(k_action, (batch, action_dim), jnp.float32)
    params = init_params(k_params, state_dim, action_dim, hidden_dim)

    # tb=128 -> 2 batch tiles, exercising the pipelined grid + resident weights.
    out = qnetwork_forward(state, action, params, tb=128)
    out = jax.block_until_ready(out)

    ref = qnetwork_ref(state, action, params)
    assert out.shape == (batch, 1), out.shape
    assert jnp.allclose(out, ref, atol=1e-4, rtol=1e-4), (out, ref)

    print("KERNEL_OK")
</pallas_src>

<mosaic_0001>
module attributes {stable_mosaic.version = 11 : i64} {
  func.func @qnet_kernel(%arg0: i32, %arg1: memref<128x8xf32, #tpu.memory_space<vmem>>, %arg2: memref<128x4xf32, #tpu.memory_space<vmem>>, %arg3: memref<8x128xf32, #tpu.memory_space<vmem>>, %arg4: memref<4x128xf32, #tpu.memory_space<vmem>>, %arg5: memref<1x128xf32, #tpu.memory_space<vmem>>, %arg6: memref<128x128xf32, #tpu.memory_space<vmem>>, %arg7: memref<1x128xf32, #tpu.memory_space<vmem>>, %arg8: memref<1x128xf32, #tpu.memory_space<vmem>>, %arg9: memref<1x1xf32, #tpu.memory_space<vmem>>, %arg10: memref<1x1x128xf32, #tpu.memory_space<vmem>>) attributes {dimension_semantics = [#tpu.dimension_semantics<parallel>], iteration_bounds = array<i64: 2>, scalar_prefetch = 0 : i64, scratch_operands = 0 : i64, tpu.core_type = #tpu.core_type<tc>, window_params = [{transform_indices = @transform_0, window_bounds = array<i64: 128, 8>}, {transform_indices = @transform_1, window_bounds = array<i64: 128, 4>}, {pipeline_mode = #tpu.pipeline_mode<synchronous>, transform_indices = @transform_2, window_bounds = array<i64: 8, 128>}, {pipeline_mode = #tpu.pipeline_mode<synchronous>, transform_indices = @transform_3, window_bounds = array<i64: 4, 128>}, {pipeline_mode = #tpu.pipeline_mode<synchronous>, transform_indices = @transform_4, window_bounds = array<i64: 1, 128>}, {pipeline_mode = #tpu.pipeline_mode<synchronous>, transform_indices = @transform_5, window_bounds = array<i64: 128, 128>}, {pipeline_mode = #tpu.pipeline_mode<synchronous>, transform_indices = @transform_6, window_bounds = array<i64: 1, 128>}, {pipeline_mode = #tpu.pipeline_mode<synchronous>, transform_indices = @transform_7, window_bounds = array<i64: 1, 128>}, {pipeline_mode = #tpu.pipeline_mode<synchronous>, transform_indices = @transform_8, window_bounds = array<i64: 1, 1>}, {transform_indices = @transform_9, window_bounds = array<i64: 1, 1, 128>}]} {
    %c0 = arith.constant 0 : index
    %c0_0 = arith.constant 0 : index
    %0 = vector.load %arg1[%c0, %c0_0] : memref<128x8xf32, #tpu.memory_space<vmem>>, vector<128x8xf32>
    %c0_1 = arith.constant 0 : index
    %c0_2 = arith.constant 0 : index
    %1 = vector.load %arg2[%c0_1, %c0_2] : memref<128x4xf32, #tpu.memory_space<vmem>>, vector<128x4xf32>
    %c0_3 = arith.constant 0 : index
    %c0_4 = arith.constant 0 : index
    %2 = vector.load %arg3[%c0_3, %c0_4] : memref<8x128xf32, #tpu.memory_space<vmem>>, vector<8x128xf32>
    %cst = arith.constant dense<0.000000e+00> : vector<128x128xf32>
    %3 = tpu.matmul %0, %2, %cst {dimension_numbers = #tpu.dot_dimension_numbers<[1], [0], [0], [1], [0, 0, 1, 1], [], []>} : vector<128x8xf32>, vector<8x128xf32>, vector<128x128xf32> -> vector<128x128xf32>
    %c0_5 = arith.constant 0 : index
    %c0_6 = arith.constant 0 : index
    %4 = vector.load %arg4[%c0_5, %c0_6] : memref<4x128xf32, #tpu.memory_space<vmem>>, vector<4x128xf32>
    %cst_7 = arith.constant dense<0.000000e+00> : vector<128x128xf32>
    %5 = tpu.matmul %1, %4, %cst_7 {dimension_numbers = #tpu.dot_dimension_numbers<[1], [0], [0], [1], [0, 0, 1, 1], [], []>} : vector<128x4xf32>, vector<4x128xf32>, vector<128x128xf32> -> vector<128x128xf32>
    %6 = arith.addf %3, %5 : vector<128x128xf32>
    %c0_8 = arith.constant 0 : index
    %c0_9 = arith.constant 0 : index
    %7 = vector.load %arg5[%c0_8, %c0_9] : memref<1x128xf32, #tpu.memory_space<vmem>>, vector<1x128xf32>
    %8 = vector.broadcast %7 : vector<1x128xf32> to vector<128x128xf32>
    %9 = arith.addf %6, %8 : vector<128x128xf32>
    %cst_10 = arith.constant 0.000000e+00 : f32
    %10 = vector.broadcast %cst_10 : f32 to vector<128x128xf32>
    %11 = arith.maximumf %9, %10 : vector<128x128xf32>
    %c0_11 = arith.constant 0 : index
    %c0_12 = arith.constant 0 : index
    %12 = vector.load %arg6[%c0_11, %c0_12] : memref<128x128xf32, #tpu.memory_space<vmem>>, vector<128x128xf32>
    %cst_13 = arith.constant dense<0.000000e+00> : vector<128x128xf32>
    %13 = tpu.matmul %11, %12, %cst_13 {dimension_numbers = #tpu.dot_dimension_numbers<[1], [0], [0], [1], [0, 0, 1, 1], [], []>} : vector<128x128xf32>, vector<128x128xf32>, vector<128x128xf32> -> vector<128x128xf32>
    %c0_14 = arith.constant 0 : index
    %c0_15 = arith.constant 0 : index
    %14 = vector.load %arg7[%c0_14, %c0_15] : memref<1x128xf32, #tpu.memory_space<vmem>>, vector<1x128xf32>
    %15 = vector.broadcast %14 : vector<1x128xf32> to vector<128x128xf32>
    %16 = arith.addf %13, %15 : vector<128x128xf32>
    %cst_16 = arith.constant 0.000000e+00 : f32
    %17 = vector.broadcast %cst_16 : f32 to vector<128x128xf32>
    %18 = arith.maximumf %16, %17 : vector<128x128xf32>
    %c0_17 = arith.constant 0 : index
    %c0_18 = arith.constant 0 : index
    %19 = vector.load %arg8[%c0_17, %c0_18] : memref<1x128xf32, #tpu.memory_space<vmem>>, vector<1x128xf32>
    %cst_19 = arith.constant dense<0.000000e+00> : vector<1x128xf32>
    %20 = tpu.matmul %19, %18, %cst_19 {dimension_numbers = #tpu.dot_dimension_numbers<[1], [1], [0], [0], [0, 0, 1, 0], [], []>} : vector<1x128xf32>, vector<128x128xf32>, vector<1x128xf32> -> vector<1x128xf32>
    %c0_20 = arith.constant 0 : index
    %c0_21 = arith.constant 0 : index
    %21 = vector.load %arg9[%c0_20, %c0_21] : memref<1x1xf32, #tpu.memory_space<vmem>>, vector<1x1xf32>
    %22 = vector.broadcast %21 : vector<1x1xf32> to vector<1x128xf32>
    %23 = arith.addf %20, %22 : vector<1x128xf32>
    %24 = vector.shape_cast %23 : vector<1x128xf32> to vector<1x1x128xf32>
    %c0_22 = arith.constant 0 : index
    %c0_23 = arith.constant 0 : index
    %c0_24 = arith.constant 0 : index
    %25 = vector.load %arg10[%c0_22, %c0_23, %c0_24] : memref<1x1x128xf32, #tpu.memory_space<vmem>>, vector<1x1x128xf32>
    tpu.vector_store %arg10[%c0_22, %c0_23, %c0_24], %24 {strides = array<i32>} : memref<1x1x128xf32, #tpu.memory_space<vmem>>, vector<1x1x128xf32>,
    return
  }
  func.func @transform_0(%arg0: i32) -> (i32, i32) {
    %c0_i32 = arith.constant 0 : i32
    %c0_i32_0 = arith.constant 0 : i32
    return %arg0, %c0_i32 : i32, i32
  }
  func.func @transform_1(%arg0: i32) -> (i32, i32) {
    %c0_i32 = arith.constant 0 : i32
    %c0_i32_0 = arith.constant 0 : i32
    return %arg0, %c0_i32 : i32, i32
  }
  func.func @transform_2(%arg0: i32) -> (i32, i32) {
    %c0_i32 = arith.constant 0 : i32
    %c0_i32_0 = arith.constant 0 : i32
    %c0_i32_1 = arith.constant 0 : i32
    return %c0_i32, %c0_i32_0 : i32, i32
  }
  func.func @transform_3(%arg0: i32) -> (i32, i32) {
    %c0_i32 = arith.constant 0 : i32
    %c0_i32_0 = arith.constant 0 : i32
    %c0_i32_1 = arith.constant 0 : i32
    return %c0_i32, %c0_i32_0 : i32, i32
  }
  func.func @transform_4(%arg0: i32) -> (i32, i32) {
    %c0_i32 = arith.constant 0 : i32
    %c0_i32_0 = arith.constant 0 : i32
    %c0_i32_1 = arith.constant 0 : i32
    return %c0_i32, %c0_i32_0 : i32, i32
  }
  func.func @transform_5(%arg0: i32) -> (i32, i32) {
    %c0_i32 = arith.constant 0 : i32
    %c0_i32_0 = arith.constant 0 : i32
    %c0_i32_1 = arith.constant 0 : i32
    return %c0_i32, %c0_i32_0 : i32, i32
  }
  func.func @transform_6(%arg0: i32) -> (i32, i32) {
    %c0_i32 = arith.constant 0 : i32
    %c0_i32_0 = arith.constant 0 : i32
    %c0_i32_1 = arith.constant 0 : i32
    return %c0_i32, %c0_i32_0 : i32, i32
  }
  func.func @transform_7(%arg0: i32) -> (i32, i32) {
    %c0_i32 = arith.constant 0 : i32
    %c0_i32_0 = arith.constant 0 : i32
    %c0_i32_1 = arith.constant 0 : i32
    return %c0_i32, %c0_i32_0 : i32, i32
  }
  func.func @transform_8(%arg0: i32) -> (i32, i32) {
    %c0_i32 = arith.constant 0 : i32
    %c0_i32_0 = arith.constant 0 : i32
    %c0_i32_1 = arith.constant 0 : i32
    return %c0_i32, %c0_i32_0 : i32, i32
  }
  func.func @transform_9(%arg0: i32) -> (i32, i32, i32) {
    %c0_i32 = arith.constant 0 : i32
    %c0_i32_0 = arith.constant 0 : i32
    %c0_i32_1 = arith.constant 0 : i32
    return %arg0, %c0_i32, %c0_i32_0 : i32, i32, i32
  }
}

</mosaic_0001>

<bundles_post_ra>
// kernel: tpu_custom_call.1
= control target key start
LH: loop header
LB: loop body
LE: loop exit
PB: predicated region body
PF: predicated region fallthrough
CT: control target
= control target key end

     0   :  { %s1936_s0 = inlined_call_operand.vmem [shape: f32[256,8], index: 0, kind: input, shape index: {}]   ;;  %s1937_s1 = inlined_call_operand.vmem [shape: f32[256,4], index: 1, kind: input, shape index: {}]   ;;  %s1938_s2 = inlined_call_operand.vmem [shape: f32[8,128], index: 2, kind: input, shape index: {}]   ;;  %s1939_s3 = inlined_call_operand.vmem [shape: f32[4,128], index: 3, kind: input, shape index: {}]   ;;  %s1940_s4 = inlined_call_operand.vmem [shape: f32[1,128], index: 4, kind: input, shape index: {}]   ;;  %s1941_s5 = inlined_call_operand.vmem [shape: f32[128,128], index: 5, kind: input, shape index: {}]   ;;  %s1942_s6 = inlined_call_operand.vmem [shape: f32[1,128], index: 6, kind: input, shape index: {}]   ;;  %s1943_s7 = inlined_call_operand.vmem [shape: f32[1,128], index: 7, kind: input, shape index: {}]   ;;  %s1944_s8 = inlined_call_operand.<no memory space> [shape: f32[1,1], index: 8, kind: input, shape index: {}]   ;;  %s1945_s9 = inlined_call_operand.hbm [shape: f32[2,1,128], index: 9, kind: output, shape index: {}]  }
   0x1   :  { %v14_v0 = vstv %s1944_s8 }
   0x2   :  { %15 = vst [vmem:[#allocation2] sm:$0x1] %v14_v0 }
   0x3   :  { %16 = vsyncpa [#allocation4], 0 }
   0x4   :  { %18 = vsyncpa [#allocation4 + $0x1], 0  ;;  %s1677_s11 = smov 0   ;;  %s1679_s12 = smov 0  }
   0x5   :  { %s1681_s13 = smov 0   ;;  %s1683_s14 = smov 0  }
   0x6 LB: > { %s1166_s8 = sadd.s32 4294967295, %s1617_s14   ;;  %s1167_s15 = sadd.s32 4294967294, %s1617_s14   ;;  %s1617_s14 = sphi %s1683_s14, %s1951_s14   ;;  %s1613_s13 = sphi %s1681_s13, %s1950_s13   ;;  %s1609_s12 = sphi %s1679_s12, %s1949_s12   ;;  %s1605_s11 = sphi %s1677_s11, %s1948_s11  }
   0x7   : > { %s1700_s16 = sadd.s32 1, %s1617_s14   ;;  %s230_s17 = sadd.s32 1, %s1613_s13 }
   0x8   : > { %s227_s18 = ssub.s32 %s1617_s14, %s1700_s16  ;;  %p240_p0 = scmp.ne.s32.totalorder %s1613_s13, %s1609_s12 }
   0x9   : > { %p228_p1 = scmp.eq.s32.totalorder %s227_s18, 0  ;;  %p241_p2 = scmp.eq.s32.totalorder %s1166_s8, 1 }
   0xa   : > { %p246_p3 = scmp.ne.s32.totalorder %s1609_s12, %s1605_s11  ;;  %p247_p4 = scmp.eq.s32.totalorder %s1167_s15, 1 }
   0xb   : > { %s1710_s19 = scalar_select %p228_p1, %s1613_s13, %s230_s17  }
   0xc   : > { %p1712_p5 = por %p241_p2, %p240_p0  ;;  %p1716_p6 = por %p247_p4, %p246_p3 }
   0xd   : > { %p1170_p7 = scmp.ge.s32.totalorder %s1617_s14, 1  ;;  %p304_p8 = scmp.lt.s32.totalorder %s1617_s14, 3 }
   0xf   : > { %p305_p9 = pnand %p1170_p7, %p304_p8 }
  0x10   : > { %v389_v1 = vld [vmem:[%s1939_s3] sm:$0xf] (!%p305_p9)  ;;  %vm439_vm0 = vcmask (!%p305_p9), 1043456   ;;  %s1728_s26 = sshll.u32 (!%p305_p9), %s1166_s8, 4  ;;  %v822_v4 = vld [vmem:[%s1941_s5 + $0x8] sm:$0xff] (!%p305_p9)  ;;  %vm390_vm1 = vcmask (!%p305_p9), 31744  }
  0x11   : > { %308 = sbr.rel (%p305_p9) target bundleno = 761 (0x2f9), region = 56  ;;  %v388_v2 = vld [vmem:[%s1938_s2] sm:$0xff] (!%p305_p9)  ;;  %1296 = vmatprep.subr.msk.mxu1 (!%p305_p9), %vm439_vm0, %v389_v1  ;;  %p345_p10 = scmp.lt.s32.totalorder (!%p305_p9), %s1728_s26, 31  ;;  %vm588_vm2 = vcmask (!%p305_p9), 64512   ;;  %v823_v6 = vld [vmem:[%s1941_s5 + $0x10] sm:$0xff] (!%p305_p9)  ;;  %v824_v7 = vld [vmem:[%s1941_s5 + $0x18] sm:$0xff] (!%p305_p9) }
  0x12   : > { %1322 = vmatprep.subr.mxu0 (!%p305_p9), %v388_v2  ;;  %v821_v3 = vld [vmem:[%s1941_s5] sm:$0xff] (!%p305_p9)  ;;  %1297 = vmatpush3.msk.msra.mxu1 (!%p305_p9), %vm439_vm0, %v389_v1  ;;  %v1443_v14 = vpack.c.bf16 (!%p305_p9), %v824_v7, %v823_v6  ;;  %v826_v16 = vld [vmem:[%s1941_s5 + $0x28] sm:$0xff] (!%p305_p9)  ;;  %v827_v22 = vld [vmem:[%s1941_s5 + $0x30] sm:$0xff] (!%p305_p9)  ;;  %vm1620_vm3 = vmmov (!%p305_p9), 0   ;;  %s342_s22 = sand.u32 (!%p305_p9), 1, %s1609_s12  }
  0x13   : > { %1323 = vmatpush3.msra.mxu0 (!%p305_p9), %v388_v2  ;;  %v1439_v5 = vpack.c.bf16 (!%p305_p9), %v822_v4, %v821_v3  ;;  %v825_v15 = vld [vmem:[%s1941_s5 + $0x20] sm:$0xff] (!%p305_p9)  ;;  %v828_v23 = vld [vmem:[%s1941_s5 + $0x38] sm:$0xff] (!%p305_p9)  ;;  %v830_v30 = vld [vmem:[%s1941_s5 + $0x48] sm:$0xff] (!%p305_p9)  ;;  %s343_s23 = scalar_lea.vmem (!%p305_p9), [#allocation3], %s342_s22 }
  0x14   : > { %v1447_v21 = vpack.c.bf16 (!%p305_p9), %v826_v16, %v825_v15  ;;  %v1451_v28 = vpack.c.bf16 (!%p305_p9), %v828_v23, %v827_v22  ;;  %v829_v29 = vld [vmem:[%s1941_s5 + $0x40] sm:$0xff] (!%p305_p9)  ;;  %v831_v36 = vld [vmem:[%s1941_s5 + $0x50] sm:$0xff] (!%p305_p9)  ;;  %v832_v37 = vld [vmem:[%s1941_s5 + $0x58] sm:$0xff] (!%p305_p9)  ;;  %s1100_s24 = sshll.u32 (!%p305_p9), %s343_s23, 4  ;;  %s1896_s24 = int_to_ptr.vmem [resolvable:$true] %s1100_s24 }
  0x15   : > { %1440 = vmatprep.subr.bf16.mxu0 (!%p305_p9), %v1439_v5  ;;  %v1455_v35 = vpack.c.bf16 (!%p305_p9), %v830_v30, %v829_v29  ;;  %v1459_v42 = vpack.c.bf16 (!%p305_p9), %v832_v37, %v831_v36  ;;  %v833_v53 = vld [vmem:[%s1941_s5 + $0x60] sm:$0xff] (!%p305_p9)  ;;  %v834_v54 = vld [vmem:[%s1941_s5 + $0x68] sm:$0xff] (!%p305_p9)  ;;  %v835_v56 = vld [vmem:[%s1941_s5 + $0x70] sm:$0xff] (!%p305_p9)  ;;  %s1555_s30 = scalar_lea.vmem (!%p305_p9), %s1896_s24, 16 }
  0x16   : > { %v1463_v55 = vpack.c.bf16 (!%p305_p9), %v834_v54, %v833_v53  ;;  %v836_v57 = vld [vmem:[%s1941_s5 + $0x78] sm:$0xff] (!%p305_p9)  ;;  %v1857_v61 = vld [vmem:[%s1940_s4] ss:$0 sm:$0xff] (!%p305_p9)  ;;  %p1556_p11 = scmp.ne.s32.totalorder (!%p305_p9), %s1896_s24, %s1555_s30 }
  0x17   : > { %v1467_v58 = vpack.c.bf16 (!%p305_p9), %v836_v57, %v835_v56 }
  0x18   : > { %s346_s10 = scalar_select %p345_p10, %s1728_s26, 31 }
  0x19   : > { %p1557_p12 = pnand %p1556_p11, %p1712_p5 }
  0x1a   : > { %s1172_s8 = sshll.u32 %s346_s10, 3  ;;  %s1623_s10 = smov [#allocation3]  }
  0x1b   : > { %s1747_s25 = scalar_lea.vmem %s1937_s1, %s1172_s8  ;;  %s1752_s29 = scalar_lea.vmem %s1936_s0, %s1172_s8 }
  0x1c   : > { %v372_v8 = vld [vmem:[%s1747_s25] sm:$0xff]  ;;  %v373_v10 = vld [vmem:[%s1747_s25 + $0x8] sm:$0xff]  ;;  %v374_v12 = vld [vmem:[%s1747_s25 + $0x10] sm:$0xff]  ;;  %p1558_p13 = pneg %p1557_p12  ;;  %s1559_s8 = sshll.u32 %s1623_s10, 4  ;;  %s1560_s8 = int_to_ptr.vmem [resolvable:$false] %s1559_s8 }
  0x1d   : > { %v356_v9 = vld [vmem:[%s1752_s29] sm:$0xff]  ;;  %1298 = vmatprep.mubr.msk.f32.mxu1 %vm390_vm1, %v372_v8  ;;  %v357_v11 = vld [vmem:[%s1752_s29 + $0x8] sm:$0xff]  ;;  %v358_v13 = vld [vmem:[%s1752_s29 + $0x10] sm:$0xff]  ;;  %s1561_s15 = scalar_lea.vmem %s1560_s8, 32  ;;  %p1562_p0 = scmp.lt.s32.totalorder %s1896_s24, %s1560_s8 }
  0x1e   : > { %1324 = vmatprep.mubr.msk.f32.mxu0 %vm588_vm2, %v356_v9  ;;  %1299 = vmatmul.mubr.msk.f32.vlgmr.msra.gmra.mrb[0].mxu1 %vm390_vm1, %v373_v10  ;;  %v375_v17 = vld [vmem:[%s1747_s25 + $0x18] sm:$0xff]  ;;  %v376_v19 = vld [vmem:[%s1747_s25 + $0x20] sm:$0xff]  ;;  %v377_v24 = vld [vmem:[%s1747_s25 + $0x28] sm:$0xff]  ;;  %p1563_p1 = scmp.lt.s32.totalorder %s1561_s15, %s1555_s30 }
  0x1f   : > { %1325 = vmatmul.mubr.msk.f32.vlgmr.msra.gmra.mrb[0].mxu0 %vm588_vm2, %v357_v11  ;;  %1301 = vmatprep.mubr.msk.f32.mxu1 %vm390_vm1, %v374_v12  ;;  %v359_v18 = vld [vmem:[%s1752_s29 + $0x18] sm:$0xff]  ;;  %v360_v20 = vld [vmem:[%s1752_s29 + $0x20] sm:$0xff]  ;;  %v361_v25 = vld [vmem:[%s1752_s29 + $0x28] sm:$0xff] }
  0x20   : > { %1327 = vmatprep.mubr.msk.f32.mxu0 %vm588_vm2, %v358_v13  ;;  %1442 = vmatpush3.bf16.msra.mxu0 %v1439_v5  ;;  %v378_v26 = vld [vmem:[%s1747_s25 + $0x30] sm:$0xff]  ;;  %v379_v31 = vld [vmem:[%s1747_s25 + $0x38] sm:$0xff]  ;;  %v380_v33 = vld [vmem:[%s1747_s25 + $0x40] sm:$0xff]  ;;  %p1564_p2 = por %p1563_p1, %p1562_p0 }
  0x21   : > { %1444 = vmatprep.subr.bf16.mxu0 %v1443_v14  ;;  %v362_v27 = vld [vmem:[%s1752_s29 + $0x30] sm:$0xff]  ;;  %v363_v32 = vld [vmem:[%s1752_s29 + $0x38] sm:$0xff]  ;;  %v364_v34 = vld [vmem:[%s1752_s29 + $0x40] sm:$0xff] }
  0x22   : > { %1302 = vmatmul.mubr.msk.f32.gmra.mrb[2].mxu1 %vm390_vm1, %v375_v17  ;;  %v381_v38 = vld [vmem:[%s1747_s25 + $0x48] sm:$0xff]  ;;  %v382_v40 = vld [vmem:[%s1747_s25 + $0x50] sm:$0xff]  ;;  %v383_v43 = vld [vmem:[%s1747_s25 + $0x58] sm:$0xff]  ;;  %p1565_p3 = pnand %p1564_p2, %p1558_p13 }
  0x23   : > { %1328 = vmatmul.mubr.msk.f32.gmra.mrb[2].mxu0 %vm588_vm2, %v359_v18  ;;  %1304 = vmatprep.mubr.msk.f32.mxu1 %vm390_vm1, %v376_v19  ;;  %v365_v39 = vld [vmem:[%s1752_s29 + $0x48] sm:$0xff]  ;;  %v366_v41 = vld [vmem:[%s1752_s29 + $0x50] sm:$0xff]  ;;  %v367_v44 = vld [vmem:[%s1752_s29 + $0x58] sm:$0xff] }
  0x24   : > { %1330 = vmatprep.mubr.msk.f32.mxu0 %vm588_vm2, %v360_v20  ;;  %1446 = vmatpush3.bf16.msra.mxu0 %v1443_v14  ;;  %v384_v45 = vld [vmem:[%s1747_s25 + $0x60] sm:$0xff]  ;;  %v385_v47 = vld [vmem:[%s1747_s25 + $0x68] sm:$0xff]  ;;  %v386_v49 = vld [vmem:[%s1747_s25 + $0x70] sm:$0xff] }
  0x25   : > { %1448 = vmatprep.subr.bf16.mxu0 %v1447_v21  ;;  %v368_v46 = vld [vmem:[%s1752_s29 + $0x60] sm:$0xff]  ;;  %v369_v48 = vld [vmem:[%s1752_s29 + $0x68] sm:$0xff]  ;;  %v370_v50 = vld [vmem:[%s1752_s29 + $0x70] sm:$0xff] }
  0x26   : > { %1305 = vmatmul.mubr.msk.f32.gmra.mrb[4].mxu1 %vm390_vm1, %v377_v24  ;;  %v387_v51 = vld [vmem:[%s1747_s25 + $0x78] sm:$0xff]  ;;  %s1894_s25 = scalar_lea.hbm %s1945_s9, %s1728_s26 }
  0x27   : > { %1331 = vmatmul.mubr.msk.f32.gmra.mrb[4].mxu0 %vm588_vm2, %v361_v25  ;;  %1307 = vmatprep.mubr.msk.f32.mxu1 %vm390_vm1, %v378_v26  ;;  %v371_v52 = vld [vmem:[%s1752_s29 + $0x78] sm:$0xff]  ;;  %s1088_s29 = scalar_lea.sflag [#allocation4], %s342_s22 }
  0x28   : > { %1333 = vmatprep.mubr.msk.f32.mxu0 %vm588_vm2, %v362_v27  ;;  %1450 = vmatpush3.bf16.msra.mxu0 %v1447_v21 }
  0x29   : > { %1452 = vmatprep.subr.bf16.mxu0 %v1451_v28 }
  0x2a   : > { %1308 = vmatmul.mubr.msk.f32.gmra.mrb[6].mxu1 %vm390_vm1, %v379_v31 }
  0x2b   : > { %1334 = vmatmul.mubr.msk.f32.gmra.mrb[6].mxu0 %vm588_vm2, %v363_v32  ;;  %1310 = vmatprep.mubr.msk.f32.mxu1 %vm390_vm1, %v380_v33 }
  0x2c   : > { %1336 = vmatprep.mubr.msk.f32.mxu0 %vm588_vm2, %v364_v34  ;;  %1454 = vmatpush3.bf16.msra.mxu0 %v1451_v28 }
  0x2d   : > { %1456 = vmatprep.subr.bf16.mxu0 %v1455_v35 }
  0x2e   : > { %1311 = vmatmul.mubr.msk.f32.gmra.mrb[8].mxu1 %vm390_vm1, %v381_v38 }
  0x2f   : > { %1337 = vmatmul.mubr.msk.f32.gmra.mrb[8].mxu0 %vm588_vm2, %v365_v39  ;;  %1313 = vmatprep.mubr.msk.f32.mxu1 %vm390_vm1, %v382_v40 }
  0x30   : > { %1339 = vmatprep.mubr.msk.f32.mxu0 %vm588_vm2, %v366_v41  ;;  %1458 = vmatpush3.bf16.msra.mxu0 %v1455_v35 }
  0x31   : > { %1460 = vmatprep.subr.bf16.mxu0 %v1459_v42 }
  0x32   : > { %1314 = vmatmul.mubr.msk.f32.gmra.mrb[10].mxu1 %vm390_vm1, %v383_v43 }
  0x33   : > { %1340 = vmatmul.mubr.msk.f32.gmra.mrb[10].mxu0 %vm588_vm2, %v367_v44  ;;  %1316 = vmatprep.mubr.msk.f32.mxu1 %vm390_vm1, %v384_v45 }
  0x34   : > { %1342 = vmatprep.mubr.msk.f32.mxu0 %vm588_vm2, %v368_v46  ;;  %1462 = vmatpush3.bf16.msra.mxu0 %v1459_v42 }
  0x35   : > { %1464 = vmatprep.subr.bf16.mxu0 %v1463_v55 }
  0x36   : > { %1317 = vmatmul.mubr.msk.f32.gmra.mrb[12].mxu1 %vm390_vm1, %v385_v47 }
  0x37   : > { %1343 = vmatmul.mubr.msk.f32.gmra.mrb[12].mxu0 %vm588_vm2, %v369_v48  ;;  %1319 = vmatprep.mubr.msk.f32.mxu1 %vm390_vm1, %v386_v49 }
  0x38   : > { %1345 = vmatprep.mubr.msk.f32.mxu0 %vm588_vm2, %v370_v50  ;;  %1466 = vmatpush3.bf16.msra.mxu0 %v1463_v55 }
  0x39   : > { %1468 = vmatprep.subr.bf16.mxu0 %v1467_v58 }
  0x3a   : > { %1320 = vmatmul.mubr.msk.f32.gmra.mrb[14].mxu1 %vm390_vm1, %v387_v51 }
  0x3b   : > { %1346 = vmatmul.mubr.msk.f32.gmra.mrb[14].mxu0 %vm588_vm2, %v371_v52 }
  0x3c   : > { %1470 = vmatpush3.bf16.msra.mxu0 %v1467_v58 }
  0xf1   : > { %v1300_v59 = vpop.f32.mrb[0].mxu1 }
  0xf2   : > { %v1326_v60 = vpop.f32.mrb[0].mxu0  ;;  %v509_v63 = vpop.f32.mrb[1].mxu1 }
  0xf3   : > { %v709_v62 = vadd.f32 %v1326_v60, %v1300_v59  ;;  %v703_v0 = vpop.f32.mrb[1].mxu0 }
  0xf4   : > { %v704_v1 = vadd.f32 %v703_v0, %v509_v63 }
  0xf5   : > { %v790_v2 = vadd.f32 %v1857_v61, %v709_v62  ;;  %v1303_v4 = vpop.f32.mrb[2].mxu1 }
  0xf6   : > { %v789_v3 = vadd.f32 %v1857_v61, %v704_v1  ;;  %v1329_v5 = vpop.f32.mrb[2].mxu0  ;;  %v519_v7 = vpop.f32.mrb[3].mxu1 }
  0xf7   : > { %v719_v6 = vadd.f32 %v1329_v5, %v1303_v4  ;;  %v713_v8 = vpop.f32.mrb[3].mxu0  ;;  %v806_v11 = vmax.f32 %v790_v2, 0.0 }
  0xf8   : > { %v805_v9 = vmax.f32 %v789_v3, 0.0  ;;  %v714_v10 = vadd.f32 %v713_v8, %v519_v7 }
  0xf9   : > { %v792_v12 = vadd.f32 %v1857_v61, %v719_v6  ;;  %v1306_v14 = vpop.f32.mrb[4].mxu1 }
  0xfa   : > { %v791_v13 = vadd.f32 %v1857_v61, %v714_v10  ;;  %1380 = vmatprep.mubr.f32.mxu0 %v805_v9  ;;  %v1332_v15 = vpop.f32.mrb[4].mxu0  ;;  %v529_v18 = vpop.f32.mrb[5].mxu1 }
  0xfb   : > { %v808_v16 = vmax.f32 %v792_v12, 0.0  ;;  %1381 = vmatmul.mubr.f32.vlgmr.msra.gmra.mrb[16].mxu0 %v806_v11  ;;  %v729_v17 = vadd.f32 %v1332_v15, %v1306_v14  ;;  %v723_v19 = vpop.f32.mrb[5].mxu0  ;;  %v1621_v14 = vmov 0.0   ;;  %v1006_v15 = vld [vmem:[#allocation2] sm:$0x1] }
  0xfc   : > { %v807_v20 = vmax.f32 %v791_v13, 0.0  ;;  %v724_v21 = vadd.f32 %v723_v19, %v529_v18  ;;  %v1619_v13 = vmov 0.0|0.0   ;;  %1436 = vmatprep.mubr.msk.f32.mxu1 %vm1620_vm3, %v1621_v14 }
  0xfd   : > { %v794_v22 = vadd.f32 %v1857_v61, %v729_v17  ;;  %v1309_v24 = vpop.f32.mrb[6].mxu1  ;;  %1471 = vmatprep.subr.bf16.mxu1 %v1619_v13  ;;  %v1209_v17 = vld [vmem:[%s1942_s6] ss:$0 sm:$0xff] }
  0xfe   : > { %1383 = vmatprep.mubr.f32.mxu0 %v807_v20  ;;  %v793_v23 = vadd.f32 %v1857_v61, %v724_v21  ;;  %v1335_v25 = vpop.f32.mrb[6].mxu0  ;;  %v539_v28 = vpop.f32.mrb[7].mxu1 }
  0xff   : > { %v810_v26 = vmax.f32 %v794_v22, 0.0  ;;  %1384 = vmatmul.mubr.f32.gmra.mrb[18].mxu0 %v808_v16  ;;  %v739_v27 = vadd.f32 %v1335_v25, %v1309_v24  ;;  %v733_v29 = vpop.f32.mrb[7].mxu0  ;;  %v1622_v16 = vmov 0  }
 0x100   : > { %v809_v30 = vmax.f32 %v793_v23, 0.0  ;;  %v734_v31 = vadd.f32 %v733_v29, %v539_v28  ;;  %1554 = vset.pattern.permute.xlu0 %v1622_v16 }
 0x101   : > { %v796_v32 = vadd.f32 %v1857_v61, %v739_v27  ;;  %v1312_v34 = vpop.f32.mrb[8].mxu1  ;;  %1009 = vperm.xlu0 %1554, %v1006_v15  }
 0x102   : > { %1386 = vmatprep.mubr.f32.mxu0 %v809_v30  ;;  %v795_v33 = vadd.f32 %v1857_v61, %v734_v31  ;;  %v1338_v35 = vpop.f32.mrb[8].mxu0  ;;  %v549_v38 = vpop.f32.mrb[9].mxu1 }
 0x103   : > { %v812_v36 = vmax.f32 %v796_v32, 0.0  ;;  %1387 = vmatmul.mubr.f32.gmra.mrb[20].mxu0 %v810_v26  ;;  %v749_v37 = vadd.f32 %v1338_v35, %v1312_v34  ;;  %v743_v39 = vpop.f32.mrb[9].mxu0 }
 0x104   : > { %v811_v40 = vmax.f32 %v795_v33, 0.0  ;;  %v744_v41 = vadd.f32 %v743_v39, %v549_v38 }
 0x105   : > { %v798_v42 = vadd.f32 %v1857_v61, %v749_v37  ;;  %v1315_v44 = vpop.f32.mrb[10].mxu1 }
 0x106   : > { %1389 = vmatprep.mubr.f32.mxu0 %v811_v40  ;;  %v797_v43 = vadd.f32 %v1857_v61, %v744_v41  ;;  %v1341_v45 = vpop.f32.mrb[10].mxu0  ;;  %v559_v48 = vpop.f32.mrb[11].mxu1 }
 0x107   : > { %v814_v46 = vmax.f32 %v798_v42, 0.0  ;;  %1390 = vmatmul.mubr.f32.gmra.mrb[22].mxu0 %v812_v36  ;;  %v759_v47 = vadd.f32 %v1341_v45, %v1315_v44  ;;  %v753_v49 = vpop.f32.mrb[11].mxu0 }
 0x108   : > { %v813_v50 = vmax.f32 %v797_v43, 0.0  ;;  %v754_v51 = vadd.f32 %v753_v49, %v559_v48 }
 0x109   : > { %v800_v52 = vadd.f32 %v1857_v61, %v759_v47  ;;  %v1318_v54 = vpop.f32.mrb[12].mxu1 }
 0x10a   : > { %1392 = vmatprep.mubr.f32.mxu0 %v813_v50  ;;  %v799_v53 = vadd.f32 %v1857_v61, %v754_v51  ;;  %v1344_v55 = vpop.f32.mrb[12].mxu0  ;;  %v569_v58 = vpop.f32.mrb[13].mxu1 }
 0x10b   : > { %v816_v56 = vmax.f32 %v800_v52, 0.0  ;;  %1393 = vmatmul.mubr.f32.gmra.mrb[24].mxu0 %v814_v46  ;;  %v769_v57 = vadd.f32 %v1344_v55, %v1318_v54  ;;  %v763_v59 = vpop.f32.mrb[13].mxu0 }
 0x10c   : > { %v815_v60 = vmax.f32 %v799_v53, 0.0  ;;  %v764_v62 = vadd.f32 %v763_v59, %v569_v58 }
 0x10d   : > { %v802_v63 = vadd.f32 %v1857_v61, %v769_v57  ;;  %v1321_v1 = vpop.f32.mrb[14].mxu1 }
 0x10e   : > { %1395 = vmatprep.mubr.f32.mxu0 %v815_v60  ;;  %v801_v0 = vadd.f32 %v1857_v61, %v764_v62  ;;  %v1347_v2 = vpop.f32.mrb[14].mxu0  ;;  %v579_v5 = vpop.f32.mrb[15].mxu1 }
 0x10f   : > { %v818_v3 = vmax.f32 %v802_v63, 0.0  ;;  %1396 = vmatmul.mubr.f32.gmra.mrb[26].mxu0 %v816_v56  ;;  %v779_v4 = vadd.f32 %v1347_v2, %v1321_v1  ;;  %v773_v6 = vpop.f32.mrb[15].mxu0 }
 0x110   : > { %v817_v7 = vmax.f32 %v801_v0, 0.0  ;;  %v774_v8 = vadd.f32 %v773_v6, %v579_v5 }
 0x111   : > { %v804_v9 = vadd.f32 %v1857_v61, %v779_v4 }
 0x112   : > { %1398 = vmatprep.mubr.f32.mxu0 %v817_v7  ;;  %v803_v10 = vadd.f32 %v1857_v61, %v774_v8 }
 0x113   : > { %v820_v11 = vmax.f32 %v804_v9, 0.0  ;;  %1399 = vmatmul.mubr.f32.gmra.mrb[28].mxu0 %v818_v3 }
 0x114   : > { %v819_v12 = vmax.f32 %v803_v10, 0.0  ;;  %v1005_v10 = vld [vmem:[%s1943_s7] sm:$0x1] }
 0x116   : > { %1401 = vmatprep.mubr.f32.mxu0 %v819_v12 }
 0x117   : > { %1402 = vmatmul.mubr.f32.gmra.mrb[30].mxu0 %v820_v11  ;;  %v1012_v11 = vlaneseq }
 0x119   : > { %v1013_v12 = vshrl.u32 %v1012_v11, 7 }
 0x11b   : > { %v1014_v14 = vsub.s32 0, %v1013_v12 }
 0x180   : > { %v1010_v15 = vpop.permute.xlu0 %1009 }
 0x181   : > { %v1015_v16 = vrot.slane %v1010_v15, %v1014_v14 }
 0x1ce   : > { %v1382_v61 = vpop.f32.mrb[16].mxu0 }
 0x1cf   : > { %v916_v18 = vadd.f32 %v1382_v61, %v1209_v17  ;;  %v910_v19 = vpop.f32.mrb[17].mxu0 }
 0x1d0   : > { %v911_v20 = vadd.f32 %v1209_v17, %v910_v19 }
 0x1d1   : > { %v990_v21 = vmax.f32 %v916_v18, 0.0 }
 0x1d2   : > { %v989_v22 = vmax.f32 %v911_v20, 0.0  ;;  %v1385_v23 = vpop.f32.mrb[18].mxu0 }
 0x1d3   : > { %v926_v24 = vadd.f32 %v1385_v23, %v1209_v17  ;;  %v920_v25 = vpop.f32.mrb[19].mxu0 }
 0x1d4   : > { %v1472_v26 = vpack.c.bf16 %v990_v21, %v989_v22  ;;  %v921_v27 = vadd.f32 %v1209_v17, %v920_v25 }
 0x1d5   : > { %v992_v28 = vmax.f32 %v926_v24, 0.0 }
 0x1d6   : > { %v991_v29 = vmax.f32 %v921_v27, 0.0  ;;  %1473 = vmatpush3.bf16.xpose.msra.mxu1 %v1472_v26  ;;  %v1388_v30 = vpop.f32.mrb[20].mxu0 }
 0x1d7   : > { %v936_v31 = vadd.f32 %v1388_v30, %v1209_v17  ;;  %v930_v32 = vpop.f32.mrb[21].mxu0  ;;  %1474 = vmatprep.subr.bf16.mxu1 %v1619_v13 }
 0x1d8   : > { %v1475_v33 = vpack.c.bf16 %v992_v28, %v991_v29  ;;  %v931_v34 = vadd.f32 %v1209_v17, %v930_v32 }
 0x1d9   : > { %v994_v35 = vmax.f32 %v936_v31, 0.0 }
 0x1da   : > { %v993_v36 = vmax.f32 %v931_v34, 0.0  ;;  %v1391_v37 = vpop.f32.mrb[22].mxu0 }
 0x1db   : > { %v946_v38 = vadd.f32 %v1391_v37, %v1209_v17  ;;  %v940_v39 = vpop.f32.mrb[23].mxu0 }
 0x1dc   : > { %v1478_v40 = vpack.c.bf16 %v994_v35, %v993_v36  ;;  %v941_v41 = vadd.f32 %v1209_v17, %v940_v39 }
 0x1dd   : > { %v996_v42 = vmax.f32 %v946_v38, 0.0 }
 0x1de   : > { %1476 = vmatpush3.bf16.xpose.msra.mxu1 %v1475_v33  ;;  %v995_v43 = vmax.f32 %v941_v41, 0.0  ;;  %v1394_v44 = vpop.f32.mrb[24].mxu0 }
 0x1df   : > { %1477 = vmatprep.subr.bf16.mxu1 %v1619_v13  ;;  %v956_v45 = vadd.f32 %v1394_v44, %v1209_v17  ;;  %v950_v46 = vpop.f32.mrb[25].mxu0 }
 0x1e0   : > { %v1481_v47 = vpack.c.bf16 %v996_v42, %v995_v43  ;;  %v951_v48 = vadd.f32 %v1209_v17, %v950_v46 }
 0x1e1   : > { %v998_v49 = vmax.f32 %v956_v45, 0.0 }
 0x1e2   : > { %v997_v50 = vmax.f32 %v951_v48, 0.0  ;;  %v1397_v51 = vpop.f32.mrb[26].mxu0 }
 0x1e3   : > { %v966_v52 = vadd.f32 %v1397_v51, %v1209_v17  ;;  %v960_v53 = vpop.f32.mrb[27].mxu0 }
 0x1e4   : > { %v1484_v54 = vpack.c.bf16 %v998_v49, %v997_v50  ;;  %v961_v55 = vadd.f32 %v1209_v17, %v960_v53 }
 0x1e5   : > { %v1000_v56 = vmax.f32 %v966_v52, 0.0 }
 0x1e6   : > { %1479 = vmatpush3.bf16.xpose.msra.mxu1 %v1478_v40  ;;  %v999_v57 = vmax.f32 %v961_v55, 0.0  ;;  %v1400_v58 = vpop.f32.mrb[28].mxu0 }
 0x1e7   : > { %1480 = vmatprep.subr.bf16.mxu1 %v1619_v13  ;;  %v976_v59 = vadd.f32 %v1400_v58, %v1209_v17  ;;  %v970_v60 = vpop.f32.mrb[29].mxu0 }
 0x1e8   : > { %v1487_v62 = vpack.c.bf16 %v1000_v56, %v999_v57  ;;  %v971_v63 = vadd.f32 %v1209_v17, %v970_v60 }
 0x1e9   : > { %v1002_v0 = vmax.f32 %v976_v59, 0.0 }
 0x1ea   : > { %v1001_v1 = vmax.f32 %v971_v63, 0.0  ;;  %v1403_v2 = vpop.f32.mrb[30].mxu0 }
 0x1eb   : > { %v986_v3 = vadd.f32 %v1403_v2, %v1209_v17  ;;  %v980_v4 = vpop.f32.mrb[31].mxu0 }
 0x1ec   : > { %v1490_v5 = vpack.c.bf16 %v1002_v0, %v1001_v1  ;;  %v981_v6 = vadd.f32 %v1209_v17, %v980_v4 }
 0x1ed   : > { %v1004_v7 = vmax.f32 %v986_v3, 0.0 }
 0x1ee   : > { %1482 = vmatpush3.bf16.xpose.msra.mxu1 %v1481_v47  ;;  %v1003_v8 = vmax.f32 %v981_v6, 0.0 }
 0x1ef   : > { %1483 = vmatprep.subr.bf16.mxu1 %v1619_v13 }
 0x1f0   : > { %v1493_v9 = vpack.c.bf16 %v1004_v7, %v1003_v8 }
 0x1f6   : > { %1485 = vmatpush3.bf16.xpose.msra.mxu1 %v1484_v54 }
 0x1f7   : > { %1486 = vmatprep.subr.bf16.mxu1 %v1619_v13 }
 0x1fe   : > { %1488 = vmatpush3.bf16.xpose.msra.mxu1 %v1487_v62 }
 0x1ff   : > { %1489 = vmatprep.subr.bf16.mxu1 %v1619_v13 }
 0x206   : > { %1491 = vmatpush3.bf16.xpose.msra.mxu1 %v1490_v5 }
 0x207   : > { %1492 = vmatprep.subr.bf16.mxu1 %v1619_v13 }
 0x20e   : > { %1494 = vmatpush3.bf16.xpose.msra.mxu1 %v1493_v9 }
 0x215   : > { %1437 = vmatmul.mubr.f32.vlgmr.msra.gmra.mrb[16].mxu1 %v1005_v10 }
 0x2e8   : > { %v1082_v17 = vpop.f32.mrb[16].mxu1 }
 0x2e9   : > { %v1083_v61 = vadd.f32 %v1082_v17, %v1015_v16  ;;  %v1438_v18 = vpop.f32.mrb[17].mxu1 }
 0x2eb   : > { %1086 = vst [vmem:[%s343_s23] sm:$0x1] %v1083_v61 }
 0x2ec   : > { %1568 = shalt.err (!%p1565_p3)
}
 0x2ed   : > { %s1569_s26 = scalar_lea.hbm %s1894_s25, 16  ;;  %s1573_s22 = scalar_lea.hbm %s1945_s9, 32 }
 0x2ee   : > { %p1570_p4 = scmp.ne.s32.totalorder %s1894_s25, %s1569_s26  ;;  %p1574_p9 = scmp.lt.u32.totalorder %s1894_s25, %s1945_s9 }
 0x2ef   : > { %p1575_p10 = scmp.lt.u32.totalorder %s1573_s22, %s1569_s26  ;;  %p1577_p12 = scmp.lt.u32.totalorder %s1569_s26, %s1894_s25 }
 0x2f0   : > { %p1571_p7 = pnand %p1570_p4, %p1712_p5 }
 0x2f1   : > { %p1576_p11 = por %p1575_p10, %p1574_p9 }
 0x2f2   : > { %p1572_p8 = pneg %p1571_p7 }
 0x2f3   : > { %p1578_p13 = por %p1577_p12, %p1576_p11 }
 0x2f5   : > { %p1579_p0 = pnand %p1578_p13, %p1572_p8 }
 0x2f7   : > { %1582 = shalt.err (!%p1579_p0)
}
 0x2f8   : > { %1511 = dma.vmem_to_hbm [thread:$0]  (%p1712_p5), %s1896_s24, 16, %s1894_s25, %s1088_s29  }
 0x2f9 PF: > { %p1517_p1 = scmp.ge.s32.totalorder %s1617_s14, 2  ;;  %s1112_s28 = sand.u32 1, %s1605_s11  }
 0x2fa   : > { %s1113_s30 = scalar_lea.sflag [#allocation4], %s1112_s28 }
 0x2fb   : > { %p1514_p2 = pnand %p1517_p1, %p1716_p6 }
 0x2fd   : > { %1600 = dma.done.wait (!%p1514_p2), %s1113_s30, 16  }
 0x2fe   : > { %1602 = vsyncadd (!%p1514_p2), %s1113_s30, 4294967280  ;;  %p21_p3 = scmp.ge.s32.totalorder %s1700_s16, 4   ;;  %s1948_s11 = smov %s1609_s12 }
 0x2ff   : > { %s1949_s12 = smov %s1613_s13  ;;  %s1950_s13 = smov %s1710_s19 }
 0x300   : > { %s1951_s14 = smov %s1700_s16  ;;  %23 = sbr.rel (!%p21_p3) target bundleno = 6 (0x6), region = 94 }
 0x307   :  { %1117 = vsyncpa [#allocation4], 1 }
 0x308   :  { %1119 = vsyncpa [#allocation4 + $0x1], 1 }

</bundles_post_ra>
